<compile_context>
chip_gen: v6e
topology: v6e:2x2x1
jax: 0.10.0
libtpu: 0.0.40
codegen_flags: <defaults>
</compile_context>

<pallas_src>
import math

import jax
import jax.numpy as jnp
from jax import lax
from jax.experimental import pallas as pl
from jax.experimental.pallas import tpu as pltpu

LEAKY_SLOPE = 0.01  # F.leaky_relu default negative_slope


def _round_up(a, b):
    return (a + b - 1) // b * b


def _vmem_padded_bytes(shape, dtype):
    """Bytes an array occupies in VMEM after (sublane, lane) tile padding."""
    itemsize = jnp.dtype(dtype).itemsize
    sub = 8 * max(1, 4 // itemsize)            # 8 rows f32, 16 rows bf16, ...
    if len(shape) == 1:
        lead, r, c = 1, 1, int(shape[0])
    else:
        r, c = int(shape[-2]), int(shape[-1])
        lead = 1
        for d in shape[:-2]:
            lead *= int(d)
    return lead * _round_up(r, sub) * _round_up(c, 128) * itemsize


def _vmem_capacity_bytes():
    try:
        cap = getattr(pltpu.get_tpu_info(), "vmem_capacity_bytes", None)
        if cap:
            return int(cap)
    except Exception:
        pass
    return 128 << 20  # v5e/v6e default


def _mlp_kernel(x_ref, *refs):
    """refs = (w0, b0, w1, b1, ..., wL, bL, out_ref).

    x_ref : (TM, in_features)   f32 or bf16 -- batch-major streamed tile
    w_i   : (out_i, in_i)       compute dtype (bf16)  -- PyTorch layout
    b_i   : (out_i, 1)          f32
    out   : (1, TM)             f32 -- lane-dense store (batch on lanes)
    """
    out_ref = refs[-1]
    params = refs[:-1]
    n_layers = len(params) // 2

    # Layer 0: contract x's feature axis (dim 1) against W0's input axis
    # (dim 1) -> (out0, TM).  Batch stays on the lane axis the whole way; no
    # explicit transpose is needed and the final store is lane-dense.
    w0 = params[0][...]
    y = lax.dot_general(w0, x_ref[...].astype(w0.dtype),
                        dimension_numbers=(((1,), (1,)), ((), ())),
                        preferred_element_type=jnp.float32) + params[1][...]
    h = jnp.maximum(y, LEAKY_SLOPE * y)            # leaky_relu (mul + max, f32)

    for i in range(1, n_layers):                   # unrolled at trace time
        w = params[2 * i][...]                     # (out_i, in_i)
        b = params[2 * i + 1][...]                 # (out_i, 1)
        # Inter-layer activation is cast to the (bf16) compute dtype at the
        # matmul input; accumulate + bias + activation stay f32.
        y = jnp.dot(w, h.astype(w.dtype), preferred_element_type=jnp.float32) + b
        h = jnp.maximum(y, LEAKY_SLOPE * y)

    out_ref[...] = h                               # (1, TM) f32


def dnn_forward(x, weights, biases, *, tm=1024, compute_dtype=jnp.bfloat16):
    """Run the whole Dnn forward in one pallas_call.

    x:       (batch, input_shape) float32
    weights: list of PyTorch-layout (out_i, in_i) float32 arrays
    biases:  list of (out_i,) float32 arrays
    returns: (batch,) float32   -- matches x.view(x.size()[0])
    """
    batch, in_features = x.shape

    # --- tile sizing: batch lives on the lane axis -> TM multiple of 128.
    batch_128 = _round_up(batch, 128)
    tm = max(128, min(_round_up(tm, 128), batch_128))
    # Keep >= 2 grid steps when batch allows so the "parallel" axis can feed
    # both TensorCores on v7x (costs one ~0.35us extra step on v5e/v6e).
    if batch_128 >= 256 and pl.cdiv(batch_128, tm) < 2:
        tm = max(128, _round_up(pl.cdiv(batch_128, 2), 128))
    batch_p = _round_up(batch, tm)
    grid = batch_p // tm

    # --- input: keep x batch-major.  If batch already divides the tile we
    # stream x straight from HBM (single read, no wrapper transpose/pad pass).
    # Otherwise one pad pass is unavoidable; fold the bf16 cast into it so the
    # streamed tile and its DMA are half-size.
    if batch_p == batch:
        xt = x
    else:
        xt = jnp.zeros((batch_p, in_features), compute_dtype)
        xt = xt.at[:batch, :].set(x.astype(compute_dtype))

    # bf16 weights for the MXU; biases stay f32 columns (broadcast over the
    # lane/batch axis in the f32 epilogue).
    w_c = [w.astype(compute_dtype) for w in weights]
    b_c = [b.astype(jnp.float32).reshape(-1, 1) for b in biases]
    # TODO(synk): for very wide nets, pack biases / fold them into W to avoid
    # the 128-lane padding of each (out, 1) column.

    args = [xt]
    for w, b in zip(w_c, b_c):
        args += [w, b]

    # --- VMEM budget with real (sublane, lane) padding of every operand.
    param_bytes = sum(_vmem_padded_bytes(a.shape, a.dtype) for a in args[1:])
    x_tile_bytes = _vmem_padded_bytes((tm, in_features), xt.dtype)
    out_tile_bytes = _vmem_padded_bytes((1, tm), jnp.float32)
    widest = max(int(w.shape[0]) for w in w_c)
    act_bytes = _vmem_padded_bytes((widest, tm), jnp.float32)

    cap = _vmem_capacity_bytes()
    ceiling = (44 << 20) if cap <= (64 << 20) else (100 << 20)  # v7x vs v5e/v6e

    def build(param_buffers):
        in_specs = [pl.BlockSpec((tm, in_features), lambda i: (i, 0))]
        for w, b in zip(w_c, b_c):
            if param_buffers == 1:
                # Constant index_map -> fetched once, resident across batch
                # tiles; single buffer (no double-buffering of stationary data).
                in_specs += [
                    pl.BlockSpec(w.shape, lambda i: (0, 0),
                                 pipeline_mode=pl.Buffered(1)),
                    pl.BlockSpec(b.shape, lambda i: (0, 0),
                                 pipeline_mode=pl.Buffered(1)),
                ]
            else:
                in_specs += [pl.BlockSpec(w.shape, lambda i: (0, 0)),
                             pl.BlockSpec(b.shape, lambda i: (0, 0))]
        out_spec = pl.BlockSpec((1, tm), lambda i: (0, i))

        need = (param_buffers * param_bytes + 2 * x_tile_bytes
                + 2 * out_tile_bytes + 4 * act_bytes + (2 << 20))
        vmem_limit = int(min(max(need, 16 << 20), ceiling))
        if vmem_limit < need:          # never clamp below the real footprint
            vmem_limit = int(need)

        return pl.pallas_call(
            _mlp_kernel,
            out_shape=jax.ShapeDtypeStruct((1, batch_p), jnp.float32),
            grid_spec=pltpu.PrefetchScalarGridSpec(
                num_scalar_prefetch=0,
                grid=(grid,),
                in_specs=in_specs,
                out_specs=out_spec,
            ),
            compiler_params=pltpu.CompilerParams(
                dimension_semantics=("parallel",),   # batch tiles across TCs
                vmem_limit_bytes=vmem_limit,
            ),
        )

    try:
        out = jax.block_until_ready(build(1)(*args))
    except Exception:
        # Fallback for Pallas versions without single-buffer pipeline_mode.
        out = jax.block_until_ready(build(2)(*args))

    return out[0, :batch]  # final .view(batch) — glue, outside the kernel


def init_dnn_params(key, input_shape, n_layers, n_nodes, bias=True):
    """Deterministic init mimicking nn.Linear default U(-1/sqrt(fan_in), ..).

    Weights are kept in native PyTorch (out, in) layout; biases are (out,).
    """
    dims = [(n_nodes, input_shape)]
    dims += [(n_nodes, n_nodes) for _ in range(n_layers - 1)]
    dims += [(1, n_nodes)]  # final Linear(n_nodes, 1) always has bias in PyTorch

    weights, biases = [], []
    for li, (fan_out, fan_in) in enumerate(dims):
        key, kw, kb = jax.random.split(key, 3)
        bound = 1.0 / math.sqrt(fan_in)
        w = jax.random.uniform(kw, (fan_out, fan_in), jnp.float32,
                               minval=-bound, maxval=bound)
        is_last = li == len(dims) - 1
        if bias or is_last:
            b = jax.random.uniform(kb, (fan_out,), jnp.float32,
                                   minval=-bound, maxval=bound)
        else:
            b = jnp.zeros((fan_out,), jnp.float32)
        weights.append(w)
        biases.append(b)
    return weights, biases


def dnn_reference(x, weights, biases, compute_dtype=jnp.bfloat16):
    """Pure-JAX reference (standard batch-major orientation, same precision)."""
    h = x.astype(jnp.float32)
    for w, b in zip(weights, biases):
        y = jnp.dot(h.astype(compute_dtype), w.astype(compute_dtype).T,
                    preferred_element_type=jnp.float32) + b.reshape(1, -1)
        h = jnp.maximum(y, LEAKY_SLOPE * y)
    return h.reshape(h.shape[0])


if __name__ == "__main__":
    # Small shapes consistent with Dnn(input_shape, n_layers, n_nodes)
    batch = 8
    input_shape = 32
    n_layers = 3
    n_nodes = 32

    key = jax.random.PRNGKey(0)
    key, kx = jax.random.split(key)
    x = jax.random.normal(kx, (batch, input_shape), jnp.float32)

    weights, biases = init_dnn_params(key, input_shape, n_layers, n_nodes,
                                      bias=True)

    out = dnn_forward(x, weights, biases)
    out = jax.block_until_ready(out)

    ref = dnn_reference(x, weights, biases)
    assert out.shape == (batch,), out.shape
    assert jnp.allclose(out, ref, atol=2e-3, rtol=2e-3), (out, ref)

    print("KERNEL_OK")
</pallas_src>

<mosaic_0001>
module attributes {stable_mosaic.version = 11 : i64} {
  func.func @_mlp_kernel(%arg0: i32, %arg1: memref<128x32xbf16, #tpu.memory_space<vmem>>, %arg2: memref<32x32xbf16, #tpu.memory_space<vmem>>, %arg3: memref<32x1xf32, #tpu.memory_space<vmem>>, %arg4: memref<32x32xbf16, #tpu.memory_space<vmem>>, %arg5: memref<32x1xf32, #tpu.memory_space<vmem>>, %arg6: memref<32x32xbf16, #tpu.memory_space<vmem>>, %arg7: memref<32x1xf32, #tpu.memory_space<vmem>>, %arg8: memref<1x32xbf16, #tpu.memory_space<vmem>>, %arg9: memref<1x1xf32, #tpu.memory_space<vmem>>, %arg10: memref<1x128xf32, #tpu.memory_space<vmem>>) attributes {dimension_semantics = [#tpu.dimension_semantics<parallel>], iteration_bounds = array<i64: 1>, scalar_prefetch = 0 : i64, scratch_operands = 0 : i64, tpu.core_type = #tpu.core_type<tc>, window_params = [{transform_indices = @transform_0, window_bounds = array<i64: 128, 32>}, {pipeline_mode = #tpu.pipeline_mode<synchronous>, transform_indices = @transform_1, window_bounds = array<i64: 32, 32>}, {pipeline_mode = #tpu.pipeline_mode<synchronous>, transform_indices = @transform_2, window_bounds = array<i64: 32, 1>}, {pipeline_mode = #tpu.pipeline_mode<synchronous>, transform_indices = @transform_3, window_bounds = array<i64: 32, 32>}, {pipeline_mode = #tpu.pipeline_mode<synchronous>, transform_indices = @transform_4, window_bounds = array<i64: 32, 1>}, {pipeline_mode = #tpu.pipeline_mode<synchronous>, transform_indices = @transform_5, window_bounds = array<i64: 32, 32>}, {pipeline_mode = #tpu.pipeline_mode<synchronous>, transform_indices = @transform_6, window_bounds = array<i64: 32, 1>}, {pipeline_mode = #tpu.pipeline_mode<synchronous>, transform_indices = @transform_7, window_bounds = array<i64: 1, 32>}, {pipeline_mode = #tpu.pipeline_mode<synchronous>, transform_indices = @transform_8, window_bounds = array<i64: 1, 1>}, {transform_indices = @transform_9, window_bounds = array<i64: 1, 128>}]} {
    %c0 = arith.constant 0 : index
    %c0_0 = arith.constant 0 : index
    %0 = vector.load %arg2[%c0, %c0_0] : memref<32x32xbf16, #tpu.memory_space<vmem>>, vector<32x32xbf16>
    %c0_1 = arith.constant 0 : index
    %c0_2 = arith.constant 0 : index
    %1 = vector.load %arg1[%c0_1, %c0_2] : memref<128x32xbf16, #tpu.memory_space<vmem>>, vector<128x32xbf16>
    %cst = arith.constant dense<0.000000e+00> : vector<32x128xf32>
    %2 = tpu.matmul %0, %1, %cst {dimension_numbers = #tpu.dot_dimension_numbers<[1], [1], [0], [0], [0, 0, 1, 0], [], []>} : vector<32x32xbf16>, vector<128x32xbf16>, vector<32x128xf32> -> vector<32x128xf32>
    %c0_3 = arith.constant 0 : index
    %c0_4 = arith.constant 0 : index
    %3 = vector.load %arg3[%c0_3, %c0_4] : memref<32x1xf32, #tpu.memory_space<vmem>>, vector<32x1xf32>
    %4 = vector.broadcast %3 : vector<32x1xf32> to vector<32x128xf32>
    %5 = arith.addf %2, %4 : vector<32x128xf32>
    %cst_5 = arith.constant 0.00999999977 : f32
    %6 = vector.broadcast %cst_5 : f32 to vector<32x128xf32>
    %7 = arith.mulf %6, %5 : vector<32x128xf32>
    %8 = arith.maximumf %5, %7 : vector<32x128xf32>
    %c0_6 = arith.constant 0 : index
    %c0_7 = arith.constant 0 : index
    %9 = vector.load %arg4[%c0_6, %c0_7] : memref<32x32xbf16, #tpu.memory_space<vmem>>, vector<32x32xbf16>
    %c0_8 = arith.constant 0 : index
    %c0_9 = arith.constant 0 : index
    %10 = vector.load %arg5[%c0_8, %c0_9] : memref<32x1xf32, #tpu.memory_space<vmem>>, vector<32x1xf32>
    %11 = arith.truncf %8 : vector<32x128xf32> to vector<32x128xbf16>
    %cst_10 = arith.constant dense<0.000000e+00> : vector<32x128xf32>
    %12 = tpu.matmul %9, %11, %cst_10 {dimension_numbers = #tpu.dot_dimension_numbers<[1], [0], [0], [1], [0, 0, 1, 1], [], []>} : vector<32x32xbf16>, vector<32x128xbf16>, vector<32x128xf32> -> vector<32x128xf32>
    %13 = vector.broadcast %10 : vector<32x1xf32> to vector<32x128xf32>
    %14 = arith.addf %12, %13 : vector<32x128xf32>
    %cst_11 = arith.constant 0.00999999977 : f32
    %15 = vector.broadcast %cst_11 : f32 to vector<32x128xf32>
    %16 = arith.mulf %15, %14 : vector<32x128xf32>
    %17 = arith.maximumf %14, %16 : vector<32x128xf32>
    %c0_12 = arith.constant 0 : index
    %c0_13 = arith.constant 0 : index
    %18 = vector.load %arg6[%c0_12, %c0_13] : memref<32x32xbf16, #tpu.memory_space<vmem>>, vector<32x32xbf16>
    %c0_14 = arith.constant 0 : index
    %c0_15 = arith.constant 0 : index
    %19 = vector.load %arg7[%c0_14, %c0_15] : memref<32x1xf32, #tpu.memory_space<vmem>>, vector<32x1xf32>
    %20 = arith.truncf %17 : vector<32x128xf32> to vector<32x128xbf16>
    %cst_16 = arith.constant dense<0.000000e+00> : vector<32x128xf32>
    %21 = tpu.matmul %18, %20, %cst_16 {dimension_numbers = #tpu.dot_dimension_numbers<[1], [0], [0], [1], [0, 0, 1, 1], [], []>} : vector<32x32xbf16>, vector<32x128xbf16>, vector<32x128xf32> -> vector<32x128xf32>
    %22 = vector.broadcast %19 : vector<32x1xf32> to vector<32x128xf32>
    %23 = arith.addf %21, %22 : vector<32x128xf32>
    %cst_17 = arith.constant 0.00999999977 : f32
    %24 = vector.broadcast %cst_17 : f32 to vector<32x128xf32>
    %25 = arith.mulf %24, %23 : vector<32x128xf32>
    %26 = arith.maximumf %23, %25 : vector<32x128xf32>
    %c0_18 = arith.constant 0 : index
    %c0_19 = arith.constant 0 : index
    %27 = vector.load %arg8[%c0_18, %c0_19] : memref<1x32xbf16, #tpu.memory_space<vmem>>, vector<1x32xbf16>
    %c0_20 = arith.constant 0 : index
    %c0_21 = arith.constant 0 : index
    %28 = vector.load %arg9[%c0_20, %c0_21] : memref<1x1xf32, #tpu.memory_space<vmem>>, vector<1x1xf32>
    %29 = arith.truncf %26 : vector<32x128xf32> to vector<32x128xbf16>
    %cst_22 = arith.constant dense<0.000000e+00> : vector<1x128xf32>
    %30 = tpu.matmul %27, %29, %cst_22 {dimension_numbers = #tpu.dot_dimension_numbers<[1], [0], [0], [1], [0, 0, 1, 1], [], []>} : vector<1x32xbf16>, vector<32x128xbf16>, vector<1x128xf32> -> vector<1x128xf32>
    %31 = vector.broadcast %28 : vector<1x1xf32> to vector<1x128xf32>
    %32 = arith.addf %30, %31 : vector<1x128xf32>
    %cst_23 = arith.constant 0.00999999977 : f32
    %33 = vector.broadcast %cst_23 : f32 to vector<1x128xf32>
    %34 = arith.mulf %33, %32 : vector<1x128xf32>
    %35 = arith.maximumf %32, %34 : vector<1x128xf32>
    %c0_24 = arith.constant 0 : index
    %c0_25 = arith.constant 0 : index
    %36 = vector.load %arg10[%c0_24, %c0_25] : memref<1x128xf32, #tpu.memory_space<vmem>>, vector<1x128xf32>
    tpu.vector_store %arg10[%c0_24, %c0_25], %35 {strides = array<i32>} : memref<1x128xf32, #tpu.memory_space<vmem>>, vector<1x128xf32>,
    return
  }
  func.func @transform_0(%arg0: i32) -> (i32, i32) {
    %c0_i32 = arith.constant 0 : i32
    %c0_i32_0 = arith.constant 0 : i32
    return %arg0, %c0_i32 : i32, i32
  }
  func.func @transform_1(%arg0: i32) -> (i32, i32) {
    %c0_i32 = arith.constant 0 : i32
    %c0_i32_0 = arith.constant 0 : i32
    %c0_i32_1 = arith.constant 0 : i32
    return %c0_i32, %c0_i32_0 : i32, i32
  }
  func.func @transform_2(%arg0: i32) -> (i32, i32) {
    %c0_i32 = arith.constant 0 : i32
    %c0_i32_0 = arith.constant 0 : i32
    %c0_i32_1 = arith.constant 0 : i32
    return %c0_i32, %c0_i32_0 : i32, i32
  }
  func.func @transform_3(%arg0: i32) -> (i32, i32) {
    %c0_i32 = arith.constant 0 : i32
    %c0_i32_0 = arith.constant 0 : i32
    %c0_i32_1 = arith.constant 0 : i32
    return %c0_i32, %c0_i32_0 : i32, i32
  }
  func.func @transform_4(%arg0: i32) -> (i32, i32) {
    %c0_i32 = arith.constant 0 : i32
    %c0_i32_0 = arith.constant 0 : i32
    %c0_i32_1 = arith.constant 0 : i32
    return %c0_i32, %c0_i32_0 : i32, i32
  }
  func.func @transform_5(%arg0: i32) -> (i32, i32) {
    %c0_i32 = arith.constant 0 : i32
    %c0_i32_0 = arith.constant 0 : i32
    %c0_i32_1 = arith.constant 0 : i32
    return %c0_i32, %c0_i32_0 : i32, i32
  }
  func.func @transform_6(%arg0: i32) -> (i32, i32) {
    %c0_i32 = arith.constant 0 : i32
    %c0_i32_0 = arith.constant 0 : i32
    %c0_i32_1 = arith.constant 0 : i32
    return %c0_i32, %c0_i32_0 : i32, i32
  }
  func.func @transform_7(%arg0: i32) -> (i32, i32) {
    %c0_i32 = arith.constant 0 : i32
    %c0_i32_0 = arith.constant 0 : i32
    %c0_i32_1 = arith.constant 0 : i32
    return %c0_i32, %c0_i32_0 : i32, i32
  }
  func.func @transform_8(%arg0: i32) -> (i32, i32) {
    %c0_i32 = arith.constant 0 : i32
    %c0_i32_0 = arith.constant 0 : i32
    %c0_i32_1 = arith.constant 0 : i32
    return %c0_i32, %c0_i32_0 : i32, i32
  }
  func.func @transform_9(%arg0: i32) -> (i32, i32) {
    %c0_i32 = arith.constant 0 : i32
    %c0_i32_0 = arith.constant 0 : i32
    return %c0_i32, %arg0 : i32, i32
  }
}

module attributes {stable_mosaic.version = 11 : i64} {
  func.func @_mlp_kernel(%arg0: i32, %arg1: memref<128x32xbf16, #tpu.memory_space<vmem>>, %arg2: memref<32x32xbf16, #tpu.memory_space<vmem>>, %arg3: memref<32x1xf32, #tpu.memory_space<vmem>>, %arg4: memref<32x32xbf16, #tpu.memory_space<vmem>>, %arg5: memref<32x1xf32, #tpu.memory_space<vmem>>, %arg6: memref<32x32xbf16, #tpu.memory_space<vmem>>, %arg7: memref<32x1xf32, #tpu.memory_space<vmem>>, %arg8: memref<1x32xbf16, #tpu.memory_space<vmem>>, %arg9: memref<1x1xf32, #tpu.memory_space<vmem>>, %arg10: memref<1x128xf32, #tpu.memory_space<vmem>>) attributes {dimension_semantics = [#tpu.dimension_semantics<parallel>], iteration_bounds = array<i64: 1>, scalar_prefetch = 0 : i64, scratch_operands = 0 : i64, tpu.core_type = #tpu.core_type<tc>, window_params = [{transform_indices = @transform_0, window_bounds = array<i64: 128, 32>}, {pipeline_mode = #tpu.pipeline_mode<synchronous>, transform_indices = @transform_1, window_bounds = array<i64: 32, 32>}, {pipeline_mode = #tpu.pipeline_mode<synchronous>, transform_indices = @transform_2, window_bounds = array<i64: 32, 1>}, {pipeline_mode = #tpu.pipeline_mode<synchronous>, transform_indices = @transform_3, window_bounds = array<i64: 32, 32>}, {pipeline_mode = #tpu.pipeline_mode<synchronous>, transform_indices = @transform_4, window_bounds = array<i64: 32, 1>}, {pipeline_mode = #tpu.pipeline_mode<synchronous>, transform_indices = @transform_5, window_bounds = array<i64: 32, 32>}, {pipeline_mode = #tpu.pipeline_mode<synchronous>, transform_indices = @transform_6, window_bounds = array<i64: 32, 1>}, {pipeline_mode = #tpu.pipeline_mode<synchronous>, transform_indices = @transform_7, window_bounds = array<i64: 1, 32>}, {pipeline_mode = #tpu.pipeline_mode<synchronous>, transform_indices = @transform_8, window_bounds = array<i64: 1, 1>}, {transform_indices = @transform_9, window_bounds = array<i64: 1, 128>}]} {
    %c0 = arith.constant 0 : index
    %c0_0 = arith.constant 0 : index
    %0 = vector.load %arg2[%c0, %c0_0] : memref<32x32xbf16, #tpu.memory_space<vmem>>, vector<32x32xbf16>
    %c0_1 = arith.constant 0 : index
    %c0_2 = arith.constant 0 : index
    %1 = vector.load %arg1[%c0_1, %c0_2] : memref<128x32xbf16, #tpu.memory_space<vmem>>, vector<128x32xbf16>
    %cst = arith.constant dense<0.000000e+00> : vector<32x128xf32>
    %2 = tpu.matmul %0, %1, %cst {dimension_numbers = #tpu.dot_dimension_numbers<[1], [1], [0], [0], [0, 0, 1, 0], [], []>} : vector<32x32xbf16>, vector<128x32xbf16>, vector<32x128xf32> -> vector<32x128xf32>
    %c0_3 = arith.constant 0 : index
    %c0_4 = arith.constant 0 : index
    %3 = vector.load %arg3[%c0_3, %c0_4] : memref<32x1xf32, #tpu.memory_space<vmem>>, vector<32x1xf32>
    %4 = vector.broadcast %3 : vector<32x1xf32> to vector<32x128xf32>
    %5 = arith.addf %2, %4 : vector<32x128xf32>
    %cst_5 = arith.constant 0.00999999977 : f32
    %6 = vector.broadcast %cst_5 : f32 to vector<32x128xf32>
    %7 = arith.mulf %6, %5 : vector<32x128xf32>
    %8 = arith.maximumf %5, %7 : vector<32x128xf32>
    %c0_6 = arith.constant 0 : index
    %c0_7 = arith.constant 0 : index
    %9 = vector.load %arg4[%c0_6, %c0_7] : memref<32x32xbf16, #tpu.memory_space<vmem>>, vector<32x32xbf16>
    %c0_8 = arith.constant 0 : index
    %c0_9 = arith.constant 0 : index
    %10 = vector.load %arg5[%c0_8, %c0_9] : memref<32x1xf32, #tpu.memory_space<vmem>>, vector<32x1xf32>
    %11 = arith.truncf %8 : vector<32x128xf32> to vector<32x128xbf16>
    %cst_10 = arith.constant dense<0.000000e+00> : vector<32x128xf32>
    %12 = tpu.matmul %9, %11, %cst_10 {dimension_numbers = #tpu.dot_dimension_numbers<[1], [0], [0], [1], [0, 0, 1, 1], [], []>} : vector<32x32xbf16>, vector<32x128xbf16>, vector<32x128xf32> -> vector<32x128xf32>
    %13 = vector.broadcast %10 : vector<32x1xf32> to vector<32x128xf32>
    %14 = arith.addf %12, %13 : vector<32x128xf32>
    %cst_11 = arith.constant 0.00999999977 : f32
    %15 = vector.broadcast %cst_11 : f32 to vector<32x128xf32>
    %16 = arith.mulf %15, %14 : vector<32x128xf32>
    %17 = arith.maximumf %14, %16 : vector<32x128xf32>
    %c0_12 = arith.constant 0 : index
    %c0_13 = arith.constant 0 : index
    %18 = vector.load %arg6[%c0_12, %c0_13] : memref<32x32xbf16, #tpu.memory_space<vmem>>, vector<32x32xbf16>
    %c0_14 = arith.constant 0 : index
    %c0_15 = arith.constant 0 : index
    %19 = vector.load %arg7[%c0_14, %c0_15] : memref<32x1xf32, #tpu.memory_space<vmem>>, vector<32x1xf32>
    %20 = arith.truncf %17 : vector<32x128xf32> to vector<32x128xbf16>
    %cst_16 = arith.constant dense<0.000000e+00> : vector<32x128xf32>
    %21 = tpu.matmul %18, %20, %cst_16 {dimension_numbers = #tpu.dot_dimension_numbers<[1], [0], [0], [1], [0, 0, 1, 1], [], []>} : vector<32x32xbf16>, vector<32x128xbf16>, vector<32x128xf32> -> vector<32x128xf32>
    %22 = vector.broadcast %19 : vector<32x1xf32> to vector<32x128xf32>
    %23 = arith.addf %21, %22 : vector<32x128xf32>
    %cst_17 = arith.constant 0.00999999977 : f32
    %24 = vector.broadcast %cst_17 : f32 to vector<32x128xf32>
    %25 = arith.mulf %24, %23 : vector<32x128xf32>
    %26 = arith.maximumf %23, %25 : vector<32x128xf32>
    %c0_18 = arith.constant 0 : index
    %c0_19 = arith.constant 0 : index
    %27 = vector.load %arg8[%c0_18, %c0_19] : memref<1x32xbf16, #tpu.memory_space<vmem>>, vector<1x32xbf16>
    %c0_20 = arith.constant 0 : index
    %c0_21 = arith.constant 0 : index
    %28 = vector.load %arg9[%c0_20, %c0_21] : memref<1x1xf32, #tpu.memory_space<vmem>>, vector<1x1xf32>
    %29 = arith.truncf %26 : vector<32x128xf32> to vector<32x128xbf16>
    %cst_22 = arith.constant dense<0.000000e+00> : vector<1x128xf32>
    %30 = tpu.matmul %27, %29, %cst_22 {dimension_numbers = #tpu.dot_dimension_numbers<[1], [0], [0], [1], [0, 0, 1, 1], [], []>} : vector<1x32xbf16>, vector<32x128xbf16>, vector<1x128xf32> -> vector<1x128xf32>
    %31 = vector.broadcast %28 : vector<1x1xf32> to vector<1x128xf32>
    %32 = arith.addf %30, %31 : vector<1x128xf32>
    %cst_23 = arith.constant 0.00999999977 : f32
    %33 = vector.broadcast %cst_23 : f32 to vector<1x128xf32>
    %34 = arith.mulf %33, %32 : vector<1x128xf32>
    %35 = arith.maximumf %32, %34 : vector<1x128xf32>
    %c0_24 = arith.constant 0 : index
    %c0_25 = arith.constant 0 : index
    %36 = vector.load %arg10[%c0_24, %c0_25] : memref<1x128xf32, #tpu.memory_space<vmem>>, vector<1x128xf32>
    tpu.vector_store %arg10[%c0_24, %c0_25], %35 {strides = array<i32>} : memref<1x128xf32, #tpu.memory_space<vmem>>, vector<1x128xf32>,
    return
  }
  func.func @transform_0(%arg0: i32) -> (i32, i32) {
    %c0_i32 = arith.constant 0 : i32
    %c0_i32_0 = arith.constant 0 : i32
    return %arg0, %c0_i32 : i32, i32
  }
  func.func @transform_1(%arg0: i32) -> (i32, i32) {
    %c0_i32 = arith.constant 0 : i32
    %c0_i32_0 = arith.constant 0 : i32
    %c0_i32_1 = arith.constant 0 : i32
    return %c0_i32, %c0_i32_0 : i32, i32
  }
  func.func @transform_2(%arg0: i32) -> (i32, i32) {
    %c0_i32 = arith.constant 0 : i32
    %c0_i32_0 = arith.constant 0 : i32
    %c0_i32_1 = arith.constant 0 : i32
    return %c0_i32, %c0_i32_0 : i32, i32
  }
  func.func @transform_3(%arg0: i32) -> (i32, i32) {
    %c0_i32 = arith.constant 0 : i32
    %c0_i32_0 = arith.constant 0 : i32
    %c0_i32_1 = arith.constant 0 : i32
    return %c0_i32, %c0_i32_0 : i32, i32
  }
  func.func @transform_4(%arg0: i32) -> (i32, i32) {
    %c0_i32 = arith.constant 0 : i32
    %c0_i32_0 = arith.constant 0 : i32
    %c0_i32_1 = arith.constant 0 : i32
    return %c0_i32, %c0_i32_0 : i32, i32
  }
  func.func @transform_5(%arg0: i32) -> (i32, i32) {
    %c0_i32 = arith.constant 0 : i32
    %c0_i32_0 = arith.constant 0 : i32
    %c0_i32_1 = arith.constant 0 : i32
    return %c0_i32, %c0_i32_0 : i32, i32
  }
  func.func @transform_6(%arg0: i32) -> (i32, i32) {
    %c0_i32 = arith.constant 0 : i32
    %c0_i32_0 = arith.constant 0 : i32
    %c0_i32_1 = arith.constant 0 : i32
    return %c0_i32, %c0_i32_0 : i32, i32
  }
  func.func @transform_7(%arg0: i32) -> (i32, i32) {
    %c0_i32 = arith.constant 0 : i32
    %c0_i32_0 = arith.constant 0 : i32
    %c0_i32_1 = arith.constant 0 : i32
    return %c0_i32, %c0_i32_0 : i32, i32
  }
  func.func @transform_8(%arg0: i32) -> (i32, i32) {
    %c0_i32 = arith.constant 0 : i32
    %c0_i32_0 = arith.constant 0 : i32
    %c0_i32_1 = arith.constant 0 : i32
    return %c0_i32, %c0_i32_0 : i32, i32
  }
  func.func @transform_9(%arg0: i32) -> (i32, i32) {
    %c0_i32 = arith.constant 0 : i32
    %c0_i32_0 = arith.constant 0 : i32
    return %c0_i32, %arg0 : i32, i32
  }
}

</mosaic_0001>

<bundles_post_ra>
// kernel: tpu_custom_call.1
= control target key start
LH: loop header
LB: loop body
LE: loop exit
PB: predicated region body
PF: predicated region fallthrough
CT: control target
= control target key end

     0   :  { %s797_s0 = inlined_call_operand.vmem [shape: bf16[128,32], index: 0, kind: input, shape index: {}]   ;;  %s798_s1 = inlined_call_operand.vmem [shape: bf16[32,32], index: 1, kind: input, shape index: {}]   ;;  %s799_s2 = inlined_call_operand.vmem [shape: f32[32,1], index: 2, kind: input, shape index: {}]   ;;  %s800_s3 = inlined_call_operand.vmem [shape: bf16[32,32], index: 3, kind: input, shape index: {}]   ;;  %s801_s4 = inlined_call_operand.vmem [shape: f32[32,1], index: 4, kind: input, shape index: {}]   ;;  %s802_s5 = inlined_call_operand.vmem [shape: bf16[32,32], index: 5, kind: input, shape index: {}]   ;;  %s803_s6 = inlined_call_operand.vmem [shape: f32[32,1], index: 6, kind: input, shape index: {}]   ;;  %s804_s7 = inlined_call_operand.vmem [shape: bf16[1,32], index: 7, kind: input, shape index: {}]   ;;  %s805_s8 = inlined_call_operand.<no memory space> [shape: f32[1,1], index: 8, kind: input, shape index: {}]   ;;  %s806_s9 = inlined_call_operand.hbm [shape: f32[1,128], index: 9, kind: output, shape index: {}]  }
   0x1   :  { %v14_v0 = vstv %s805_s8 }
   0x2   :  { %15 = vst [vmem:[#allocation2] sm:$0x1] %v14_v0 }
   0x3   :  { %v597_v1 = vld [vmem:[%s797_s0 + $0x38] sm:$0xff]   ;;  %vm130_vm0 = vcmask 261120   ;;  %v598_v2 = vld [vmem:[%s797_s0 + $0x30] sm:$0xff]   ;;  %v633_v4 = vmov 0   ;;  %v599_v5 = vld [vmem:[%s797_s0 + $0x28] sm:$0xff]  }
   0x4   :  { %583 = vmatprep.subr.msk.bf16.mxu0 %vm130_vm0, %v597_v1  ;;  %v159_v3 = vsel %vm130_vm0, %v597_v1, 0  ;;  %595 = vset.pattern.permute.xlu0 %v633_v4  ;;  %v156_v6 = vsel %vm130_vm0, %v598_v2, 0  ;;  %v605_v7 = vld [vmem:[%s798_s1] sm:$0xff]   ;;  %v58_v8 = vld [vmem:[%s799_s2 + $0x10] sm:$0xff]  ;;  %v59_v10 = vld [vmem:[%s799_s2 + $0x18] sm:$0xff]  ;;  %v153_v12 = vsel %vm130_vm0, %v599_v5, 0 }
   0x5   :  { %540 = vmatpush3.bf16.xpose.msra.mxu0 %v159_v3  ;;  %596 = vset.pattern.permute.xlu1 %v633_v4  ;;  %v56_v9 = vld [vmem:[%s799_s2] sm:$0xff]  ;;  %v57_v11 = vld [vmem:[%s799_s2 + $0x8] sm:$0xff]  ;;  %v224_v14 = vld [vmem:[%s801_s4 + $0x10] sm:$0xff] }
   0x6   :  { %584 = vmatprep.subr.msk.bf16.mxu0 %vm130_vm0, %v598_v2  ;;  %555 = vmatprep.mubr.msk.bf16.mxu0 %vm130_vm0, %v605_v7  ;;  %v600_v13 = vld [vmem:[%s797_s0 + $0x20] sm:$0xff]   ;;  %v225_v15 = vld [vmem:[%s801_s4 + $0x18] sm:$0xff] }
   0x7   :  { %72 = vperm.xlu0 %595, %v58_v8   ;;  %62 = vperm.xlu1 %596, %v56_v9  }
   0xb   :  { %77 = vperm.xlu0 %595, %v59_v10   ;;  %67 = vperm.xlu1 %596, %v57_v11  }
   0xd   :  { %542 = vmatpush3.bf16.xpose.msra.mxu0 %v156_v6 }
   0xe   :  { %585 = vmatprep.subr.msk.bf16.mxu0 %vm130_vm0, %v599_v5 }
   0xf   :  { %16 = vsyncpa [#allocation4], 0  ;;  %240 = vperm.xlu0 %595, %v224_v14   ;;  %v222_v16 = vld [vmem:[%s801_s4] sm:$0xff]  ;;  %245 = vperm.xlu1 %596, %v225_v15   ;;  %v223_v17 = vld [vmem:[%s801_s4 + $0x8] sm:$0xff]  ;;  %v150_v18 = vsel %vm130_vm0, %v600_v13, 0  ;;  %vm635_vm1 = vmmov 0  }
  0x10   :  { %v601_v19 = vld [vmem:[%s797_s0 + $0x18] sm:$0xff]   ;;  %v327_v20 = vld [vmem:[%s803_s6 + $0x10] sm:$0xff]  ;;  %v325_v22 = vld [vmem:[%s803_s6] sm:$0xff]  ;;  %s636_s13 = smov [#allocation3]  }
  0x11   :  { %v328_v21 = vld [vmem:[%s803_s6 + $0x18] sm:$0xff]  ;;  %v326_v23 = vld [vmem:[%s803_s6 + $0x8] sm:$0xff]  ;;  %v147_v24 = vsel %vm130_vm0, %v601_v19, 0  ;;  %v602_v25 = vld [vmem:[%s797_s0 + $0x10] sm:$0xff]   ;;  %s489_s14 = sshll.u32 %s636_s13, 4  ;;  %s490_s14 = int_to_ptr.vmem [resolvable:$true] %s489_s14 }
  0x12   :  { %v425_v26 = vld [vmem:[#allocation2] sm:$0x1]  ;;  %v144_v27 = vsel %vm130_vm0, %v602_v25, 0  ;;  %v603_v28 = vld [vmem:[%s797_s0 + $0x8] sm:$0xff]   ;;  %s611_s8 = scalar_lea.vmem %s490_s14, 16  ;;  %p616_p1 = scmp.lt.s32.totalorder %s490_s14, %s490_s14 }
  0x13   :  { %230 = vperm.xlu0 %595, %v222_v16   ;;  %235 = vperm.xlu1 %596, %v223_v17   ;;  %v141_v29 = vsel %vm130_vm0, %v603_v28, 0  ;;  %v604_v30 = vld [vmem:[%s797_s0] sm:$0xff]   ;;  %v606_v32 = vld [vmem:[%s798_s1 + $0x8] sm:$0xff]   ;;  %v634_v17 = vmov 0.0   ;;  %p612_p0 = scmp.ne.s32.totalorder %s490_s14, %s611_s8 }
  0x14   :  { %v138_v31 = vsel %vm130_vm0, %v604_v30, 0  ;;  %v607_v33 = vld [vmem:[%s800_s3] sm:$0xff]   ;;  %v608_v56 = vld [vmem:[%s800_s3 + $0x8] sm:$0xff]  }
  0x15   :  { %544 = vmatpush3.bf16.xpose.msra.mxu0 %v153_v12  ;;  %563 = vmatprep.mubr.msk.bf16.mxu1 %vm130_vm0, %v607_v33  ;;  %v609_v57 = vld [vmem:[%s802_s5] sm:$0xff]   ;;  %v610_v16 = vld [vmem:[%s802_s5 + $0x8] sm:$0xff]  }
  0x16   :  { %586 = vmatprep.subr.msk.bf16.mxu0 %vm130_vm0, %v600_v13 }
  0x17   :  { %343 = vperm.xlu0 %595, %v327_v20   ;;  %348 = vperm.xlu1 %596, %v328_v21  }
  0x1b   :  { %333 = vperm.xlu0 %595, %v325_v22   ;;  %338 = vperm.xlu1 %596, %v326_v23  }
  0x1d   :  { %546 = vmatpush3.bf16.xpose.msra.mxu0 %v150_v18 }
  0x1e   :  { %587 = vmatprep.subr.msk.bf16.mxu0 %vm130_vm0, %v601_v19 }
  0x1f   :  { %430 = vperm.xlu0 %595, %v425_v26  }
  0x25   :  { %548 = vmatpush3.bf16.xpose.msra.mxu0 %v147_v24 }
  0x26   :  { %588 = vmatprep.subr.msk.bf16.mxu0 %vm130_vm0, %v602_v25 }
  0x2d   :  { %550 = vmatpush3.bf16.xpose.msra.mxu0 %v144_v27 }
  0x2e   :  { %589 = vmatprep.subr.msk.bf16.mxu0 %vm130_vm0, %v603_v28 }
  0x35   :  { %552 = vmatpush3.bf16.xpose.msra.mxu0 %v141_v29 }
  0x36   :  { %590 = vmatprep.subr.msk.bf16.mxu0 %vm130_vm0, %v604_v30 }
  0x3d   :  { %554 = vmatpush3.bf16.xpose.msra.mxu0 %v138_v31 }
  0x44   :  { %556 = vmatmul.mubr.msk.bf16.vlgmr.msra.gmra.mxu0 %vm130_vm0, %v606_v32 }
  0x82   :  { %v73_v34 = vpop.permute.xlu0 %72  ;;  %v63_v35 = vpop.permute.xlu1 %62 }
  0x86   :  { %v78_v40 = vpop.permute.xlu0 %77  ;;  %v68_v44 = vpop.permute.xlu1 %67 }
  0x8a   :  { %v241_v58 = vpop.permute.xlu0 %240  ;;  %v246_v59 = vpop.permute.xlu1 %245 }
  0x8e   :  { %v231_v62 = vpop.permute.xlu0 %230  ;;  %v236_v4 = vpop.permute.xlu1 %235 }
  0x92   :  { %v344_v18 = vpop.permute.xlu0 %343  ;;  %v349_v19 = vpop.permute.xlu1 %348 }
  0x96   :  { %v334_v23 = vpop.permute.xlu0 %333  ;;  %v339_v28 = vpop.permute.xlu1 %338 }
 0x104   :  { %v557_v36 = vpop.f32.mrf.mxu0 }
 0x105   :  { %v204_v37 = vadd.f32 %v557_v36, %v73_v34 }
 0x106   :  { %v195_v38 = vpop.f32.mrf.mxu0 }
 0x107   :  { %v196_v39 = vadd.f32 %v195_v38, %v63_v35  ;;  %v212_v42 = vmul.f32 0.01, %v204_v37 }
 0x108   :  { %v558_v41 = vpop.f32.mrf.mxu0 }
 0x109   :  { %v207_v43 = vadd.f32 %v558_v41, %v78_v40  ;;  %v210_v46 = vmul.f32 0.01, %v196_v39  ;;  %v216_v49 = vmax.f32 %v204_v37, %v212_v42  ;;  %v424_v40 = vld [vmem:[%s804_s7] sm:$0x1]  ;;  %v433_v41 = vlaneseq  ;;  %s615_s7 = scalar_lea.vmem %s490_s14, 32 }
 0x10a   :  { %v198_v45 = vpop.f32.mrf.mxu0  ;;  %p617_p2 = scmp.lt.s32.totalorder %s615_s7, %s611_s8 }
 0x10b   :  { %v213_v47 = vmul.f32 0.01, %v207_v43  ;;  %v199_v48 = vadd.f32 %v198_v45, %v68_v44  ;;  %v214_v52 = vmax.f32 %v196_v39, %v210_v46  ;;  %v434_v42 = vshrl.u32 %v433_v41, 7  ;;  %v431_v44 = vpop.permute.xlu0 %430 }
 0x10c   :  { %p618_p3 = por %p617_p2, %p616_p1 }
 0x10d   :  { %v217_v50 = vmax.f32 %v207_v43, %v213_v47  ;;  %v211_v51 = vmul.f32 0.01, %v199_v48  ;;  %v435_v43 = vsub.s32 0, %v434_v42 }
 0x10e   :  { %p619_p4 = pnand %p618_p3, %p612_p0 }
 0x10f   :  { %v215_v53 = vmax.f32 %v199_v48, %v211_v51  ;;  %v227_v54 = vpack.c.bf16 %v217_v50, %v216_v49  ;;  %v436_v45 = vrot.slane %v431_v44, %v435_v43 }
 0x111   :  { %559 = vmatprep.subr.bf16.mxu1 %v227_v54  ;;  %v226_v55 = vpack.c.bf16 %v215_v53, %v214_v52 }
 0x112   :  { %560 = vmatpush3.bf16.msra.mxu1 %v227_v54 }
 0x113   :  { %561 = vmatprep.subr.bf16.mxu1 %v226_v55 }
 0x116   :  { %562 = vmatpush3.bf16.msra.mxu1 %v226_v55 }
 0x119   :  { %564 = vmatmul.mubr.msk.bf16.vlgmr.msra.gmra.mxu1 %vm130_vm0, %v608_v56 }
 0x11a   :  { %571 = vmatprep.mubr.msk.bf16.mxu1 %vm130_vm0, %v609_v57 }
 0x1d9   :  { %v565_v60 = vpop.f32.mrf.mxu1 }
 0x1da   :  { %v307_v61 = vadd.f32 %v565_v60, %v241_v58 }
 0x1db   :  { %v298_v63 = vpop.f32.mrf.mxu1 }
 0x1dc   :  { %v299_v0 = vadd.f32 %v298_v63, %v231_v62  ;;  %v315_v2 = vmul.f32 0.01, %v307_v61 }
 0x1dd   :  { %v566_v1 = vpop.f32.mrf.mxu1 }
 0x1de   :  { %v310_v3 = vadd.f32 %v566_v1, %v246_v59  ;;  %v313_v6 = vmul.f32 0.01, %v299_v0  ;;  %v319_v9 = vmax.f32 %v307_v61, %v315_v2 }
 0x1df   :  { %v301_v5 = vpop.f32.mrf.mxu1 }
 0x1e0   :  { %v316_v7 = vmul.f32 0.01, %v310_v3  ;;  %v302_v8 = vadd.f32 %v301_v5, %v236_v4  ;;  %v317_v12 = vmax.f32 %v299_v0, %v313_v6 }
 0x1e2   :  { %v320_v10 = vmax.f32 %v310_v3, %v316_v7  ;;  %v314_v11 = vmul.f32 0.01, %v302_v8 }
 0x1e4   :  { %v318_v13 = vmax.f32 %v302_v8, %v314_v11  ;;  %v330_v14 = vpack.c.bf16 %v320_v10, %v319_v9 }
 0x1e6   :  { %567 = vmatprep.subr.bf16.mxu1 %v330_v14  ;;  %v329_v15 = vpack.c.bf16 %v318_v13, %v317_v12 }
 0x1e7   :  { %568 = vmatpush3.bf16.msra.mxu1 %v330_v14 }
 0x1e8   :  { %569 = vmatprep.subr.bf16.mxu1 %v329_v15 }
 0x1eb   :  { %570 = vmatpush3.bf16.msra.mxu1 %v329_v15 }
 0x1ec   :  { %575 = vmatprep.subr.bf16.mxu1 %v634_v17 }
 0x1ee   :  { %572 = vmatmul.mubr.msk.bf16.vlgmr.msra.gmra.mxu1 %vm130_vm0, %v610_v16 }
 0x1ef   :  { %579 = vmatprep.mubr.msk.bf16.mxu1 %vm635_vm1, %v634_v17 }
 0x2ae   :  { %v573_v20 = vpop.f32.mrf.mxu1 }
 0x2af   :  { %v410_v21 = vadd.f32 %v573_v20, %v344_v18 }
 0x2b0   :  { %v401_v22 = vpop.f32.mrf.mxu1 }
 0x2b1   :  { %v418_v25 = vmul.f32 0.01, %v410_v21  ;;  %v402_v26 = vadd.f32 %v401_v22, %v334_v23 }
 0x2b2   :  { %v574_v24 = vpop.f32.mrf.mxu1 }
 0x2b3   :  { %v413_v27 = vadd.f32 %v574_v24, %v349_v19  ;;  %v422_v32 = vmax.f32 %v410_v21, %v418_v25  ;;  %v416_v33 = vmul.f32 0.01, %v402_v26 }
 0x2b4   :  { %v404_v29 = vpop.f32.mrf.mxu1 }
 0x2b5   :  { %v419_v30 = vmul.f32 0.01, %v413_v27  ;;  %v405_v31 = vadd.f32 %v404_v29, %v339_v28  ;;  %v420_v38 = vmax.f32 %v402_v26, %v416_v33 }
 0x2b7   :  { %v423_v34 = vmax.f32 %v413_v27, %v419_v30  ;;  %v417_v35 = vmul.f32 0.01, %v405_v31 }
 0x2b9   :  { %v427_v36 = vpack.c.bf16 %v423_v34, %v422_v32  ;;  %v421_v37 = vmax.f32 %v405_v31, %v417_v35 }
 0x2bb   :  { %576 = vmatpush3.bf16.msra.mxu1 %v427_v36  ;;  %v426_v39 = vpack.c.bf16 %v421_v37, %v420_v38 }
 0x2bc   :  { %577 = vmatprep.subr.bf16.mxu1 %v634_v17 }
 0x2bf   :  { %578 = vmatpush3.bf16.msra.mxu1 %v426_v39 }
 0x2c2   :  { %580 = vmatmul.mubr.msk.bf16.vlgmr.msra.gmra.mxu1 %vm130_vm0, %v424_v40 }
 0x382   :  { %v474_v46 = vpop.f32.mrf.mxu1 }
 0x383   :  { %v475_v47 = vadd.f32 %v474_v46, %v436_v45 }
 0x384   :  { %v581_v48 = vpop.f32.mrf.mxu1 }
 0x385   :  { %v480_v49 = vmul.f32 0.01, %v475_v47 }
 0x386   :  { %v477_v50 = vpop.f32.mrf.mxu1 }
 0x387   :  { %v481_v51 = vmax.f32 %v475_v47, %v480_v49 }
 0x388   :  { %v582_v52 = vpop.f32.mrf.mxu1 }
 0x389   :  { %482 = vst [vmem:[#allocation3] sm:$0x1] %v481_v51 }
 0x38a   :  { %622 = shalt.err (!%p619_p4)
}
 0x38b   :  { %492 = dma.vmem_to_hbm [thread:$0]  %s490_s14, 16, %s806_s9, [#allocation4]  }
 0x38c   :  { %631 = dma.done.wait [#allocation4], 16  }
 0x38d   :  { %632 = vsyncadd [#allocation4], 4294967280 }
 0x38e   :  { %496 = vsyncpa [#allocation4], 1 }

// kernel: tpu_custom_call.1
= control target key start
LH: loop header
LB: loop body
LE: loop exit
PB: predicated region body
PF: predicated region fallthrough
CT: control target
= control target key end

     0   :  { %s797_s0 = inlined_call_operand.vmem [shape: bf16[128,32], index: 0, kind: input, shape index: {}]   ;;  %s798_s1 = inlined_call_operand.vmem [shape: bf16[32,32], index: 1, kind: input, shape index: {}]   ;;  %s799_s2 = inlined_call_operand.vmem [shape: f32[32,1], index: 2, kind: input, shape index: {}]   ;;  %s800_s3 = inlined_call_operand.vmem [shape: bf16[32,32], index: 3, kind: input, shape index: {}]   ;;  %s801_s4 = inlined_call_operand.vmem [shape: f32[32,1], index: 4, kind: input, shape index: {}]   ;;  %s802_s5 = inlined_call_operand.vmem [shape: bf16[32,32], index: 5, kind: input, shape index: {}]   ;;  %s803_s6 = inlined_call_operand.vmem [shape: f32[32,1], index: 6, kind: input, shape index: {}]   ;;  %s804_s7 = inlined_call_operand.vmem [shape: bf16[1,32], index: 7, kind: input, shape index: {}]   ;;  %s805_s8 = inlined_call_operand.<no memory space> [shape: f32[1,1], index: 8, kind: input, shape index: {}]   ;;  %s806_s9 = inlined_call_operand.hbm [shape: f32[1,128], index: 9, kind: output, shape index: {}]  }
   0x1   :  { %v14_v0 = vstv %s805_s8 }
   0x2   :  { %15 = vst [vmem:[#allocation2] sm:$0x1] %v14_v0 }
   0x3   :  { %v597_v1 = vld [vmem:[%s797_s0 + $0x38] sm:$0xff]   ;;  %vm130_vm0 = vcmask 261120   ;;  %v598_v2 = vld [vmem:[%s797_s0 + $0x30] sm:$0xff]   ;;  %v633_v4 = vmov 0   ;;  %v599_v5 = vld [vmem:[%s797_s0 + $0x28] sm:$0xff]  }
   0x4   :  { %583 = vmatprep.subr.msk.bf16.mxu0 %vm130_vm0, %v597_v1  ;;  %v159_v3 = vsel %vm130_vm0, %v597_v1, 0  ;;  %595 = vset.pattern.permute.xlu0 %v633_v4  ;;  %v156_v6 = vsel %vm130_vm0, %v598_v2, 0  ;;  %v605_v7 = vld [vmem:[%s798_s1] sm:$0xff]   ;;  %v58_v8 = vld [vmem:[%s799_s2 + $0x10] sm:$0xff]  ;;  %v59_v10 = vld [vmem:[%s799_s2 + $0x18] sm:$0xff]  ;;  %v153_v12 = vsel %vm130_vm0, %v599_v5, 0 }
   0x5   :  { %540 = vmatpush3.bf16.xpose.msra.mxu0 %v159_v3  ;;  %596 = vset.pattern.permute.xlu1 %v633_v4  ;;  %v56_v9 = vld [vmem:[%s799_s2] sm:$0xff]  ;;  %v57_v11 = vld [vmem:[%s799_s2 + $0x8] sm:$0xff]  ;;  %v224_v14 = vld [vmem:[%s801_s4 + $0x10] sm:$0xff] }
   0x6   :  { %584 = vmatprep.subr.msk.bf16.mxu0 %vm130_vm0, %v598_v2  ;;  %555 = vmatprep.mubr.msk.bf16.mxu0 %vm130_vm0, %v605_v7  ;;  %v600_v13 = vld [vmem:[%s797_s0 + $0x20] sm:$0xff]   ;;  %v225_v15 = vld [vmem:[%s801_s4 + $0x18] sm:$0xff] }
   0x7   :  { %72 = vperm.xlu0 %595, %v58_v8   ;;  %62 = vperm.xlu1 %596, %v56_v9  }
   0xb   :  { %77 = vperm.xlu0 %595, %v59_v10   ;;  %67 = vperm.xlu1 %596, %v57_v11  }
   0xd   :  { %542 = vmatpush3.bf16.xpose.msra.mxu0 %v156_v6 }
   0xe   :  { %585 = vmatprep.subr.msk.bf16.mxu0 %vm130_vm0, %v599_v5 }
   0xf   :  { %16 = vsyncpa [#allocation4], 0  ;;  %240 = vperm.xlu0 %595, %v224_v14   ;;  %v222_v16 = vld [vmem:[%s801_s4] sm:$0xff]  ;;  %245 = vperm.xlu1 %596, %v225_v15   ;;  %v223_v17 = vld [vmem:[%s801_s4 + $0x8] sm:$0xff]  ;;  %v150_v18 = vsel %vm130_vm0, %v600_v13, 0  ;;  %vm635_vm1 = vmmov 0  }
  0x10   :  { %v601_v19 = vld [vmem:[%s797_s0 + $0x18] sm:$0xff]   ;;  %v327_v20 = vld [vmem:[%s803_s6 + $0x10] sm:$0xff]  ;;  %v325_v22 = vld [vmem:[%s803_s6] sm:$0xff]  ;;  %s636_s13 = smov [#allocation3]  }
  0x11   :  { %v328_v21 = vld [vmem:[%s803_s6 + $0x18] sm:$0xff]  ;;  %v326_v23 = vld [vmem:[%s803_s6 + $0x8] sm:$0xff]  ;;  %v147_v24 = vsel %vm130_vm0, %v601_v19, 0  ;;  %v602_v25 = vld [vmem:[%s797_s0 + $0x10] sm:$0xff]   ;;  %s489_s14 = sshll.u32 %s636_s13, 4  ;;  %s490_s14 = int_to_ptr.vmem [resolvable:$true] %s489_s14 }
  0x12   :  { %v425_v26 = vld [vmem:[#allocation2] sm:$0x1]  ;;  %v144_v27 = vsel %vm130_vm0, %v602_v25, 0  ;;  %v603_v28 = vld [vmem:[%s797_s0 + $0x8] sm:$0xff]   ;;  %s611_s8 = scalar_lea.vmem %s490_s14, 16  ;;  %p616_p1 = scmp.lt.s32.totalorder %s490_s14, %s490_s14 }
  0x13   :  { %230 = vperm.xlu0 %595, %v222_v16   ;;  %235 = vperm.xlu1 %596, %v223_v17   ;;  %v141_v29 = vsel %vm130_vm0, %v603_v28, 0  ;;  %v604_v30 = vld [vmem:[%s797_s0] sm:$0xff]   ;;  %v606_v32 = vld [vmem:[%s798_s1 + $0x8] sm:$0xff]   ;;  %v634_v17 = vmov 0.0   ;;  %p612_p0 = scmp.ne.s32.totalorder %s490_s14, %s611_s8 }
  0x14   :  { %v138_v31 = vsel %vm130_vm0, %v604_v30, 0  ;;  %v607_v33 = vld [vmem:[%s800_s3] sm:$0xff]   ;;  %v608_v56 = vld [vmem:[%s800_s3 + $0x8] sm:$0xff]  }
  0x15   :  { %544 = vmatpush3.bf16.xpose.msra.mxu0 %v153_v12  ;;  %563 = vmatprep.mubr.msk.bf16.mxu1 %vm130_vm0, %v607_v33  ;;  %v609_v57 = vld [vmem:[%s802_s5] sm:$0xff]   ;;  %v610_v16 = vld [vmem:[%s802_s5 + $0x8] sm:$0xff]  }
  0x16   :  { %586 = vmatprep.subr.msk.bf16.mxu0 %vm130_vm0, %v600_v13 }
  0x17   :  { %343 = vperm.xlu0 %595, %v327_v20   ;;  %348 = vperm.xlu1 %596, %v328_v21  }
  0x1b   :  { %333 = vperm.xlu0 %595, %v325_v22   ;;  %338 = vperm.xlu1 %596, %v326_v23  }
  0x1d   :  { %546 = vmatpush3.bf16.xpose.msra.mxu0 %v150_v18 }
  0x1e   :  { %587 = vmatprep.subr.msk.bf16.mxu0 %vm130_vm0, %v601_v19 }
  0x1f   :  { %430 = vperm.xlu0 %595, %v425_v26  }
  0x25   :  { %548 = vmatpush3.bf16.xpose.msra.mxu0 %v147_v24 }
  0x26   :  { %588 = vmatprep.subr.msk.bf16.mxu0 %vm130_vm0, %v602_v25 }
  0x2d   :  { %550 = vmatpush3.bf16.xpose.msra.mxu0 %v144_v27 }
  0x2e   :  { %589 = vmatprep.subr.msk.bf16.mxu0 %vm130_vm0, %v603_v28 }
  0x35   :  { %552 = vmatpush3.bf16.xpose.msra.mxu0 %v141_v29 }
  0x36   :  { %590 = vmatprep.subr.msk.bf16.mxu0 %vm130_vm0, %v604_v30 }
  0x3d   :  { %554 = vmatpush3.bf16.xpose.msra.mxu0 %v138_v31 }
  0x44   :  { %556 = vmatmul.mubr.msk.bf16.vlgmr.msra.gmra.mxu0 %vm130_vm0, %v606_v32 }
  0x82   :  { %v73_v34 = vpop.permute.xlu0 %72  ;;  %v63_v35 = vpop.permute.xlu1 %62 }
  0x86   :  { %v78_v40 = vpop.permute.xlu0 %77  ;;  %v68_v44 = vpop.permute.xlu1 %67 }
  0x8a   :  { %v241_v58 = vpop.permute.xlu0 %240  ;;  %v246_v59 = vpop.permute.xlu1 %245 }
  0x8e   :  { %v231_v62 = vpop.permute.xlu0 %230  ;;  %v236_v4 = vpop.permute.xlu1 %235 }
  0x92   :  { %v344_v18 = vpop.permute.xlu0 %343  ;;  %v349_v19 = vpop.permute.xlu1 %348 }
  0x96   :  { %v334_v23 = vpop.permute.xlu0 %333  ;;  %v339_v28 = vpop.permute.xlu1 %338 }
 0x104   :  { %v557_v36 = vpop.f32.mrf.mxu0 }
 0x105   :  { %v204_v37 = vadd.f32 %v557_v36, %v73_v34 }
 0x106   :  { %v195_v38 = vpop.f32.mrf.mxu0 }
 0x107   :  { %v196_v39 = vadd.f32 %v195_v38, %v63_v35  ;;  %v212_v42 = vmul.f32 0.01, %v204_v37 }
 0x108   :  { %v558_v41 = vpop.f32.mrf.mxu0 }
 0x109   :  { %v207_v43 = vadd.f32 %v558_v41, %v78_v40  ;;  %v210_v46 = vmul.f32 0.01, %v196_v39  ;;  %v216_v49 = vmax.f32 %v204_v37, %v212_v42  ;;  %v424_v40 = vld [vmem:[%s804_s7] sm:$0x1]  ;;  %v433_v41 = vlaneseq  ;;  %s615_s7 = scalar_lea.vmem %s490_s14, 32 }
 0x10a   :  { %v198_v45 = vpop.f32.mrf.mxu0  ;;  %p617_p2 = scmp.lt.s32.totalorder %s615_s7, %s611_s8 }
 0x10b   :  { %v213_v47 = vmul.f32 0.01, %v207_v43  ;;  %v199_v48 = vadd.f32 %v198_v45, %v68_v44  ;;  %v214_v52 = vmax.f32 %v196_v39, %v210_v46  ;;  %v434_v42 = vshrl.u32 %v433_v41, 7  ;;  %v431_v44 = vpop.permute.xlu0 %430 }
 0x10c   :  { %p618_p3 = por %p617_p2, %p616_p1 }
 0x10d   :  { %v217_v50 = vmax.f32 %v207_v43, %v213_v47  ;;  %v211_v51 = vmul.f32 0.01, %v199_v48  ;;  %v435_v43 = vsub.s32 0, %v434_v42 }
 0x10e   :  { %p619_p4 = pnand %p618_p3, %p612_p0 }
 0x10f   :  { %v215_v53 = vmax.f32 %v199_v48, %v211_v51  ;;  %v227_v54 = vpack.c.bf16 %v217_v50, %v216_v49  ;;  %v436_v45 = vrot.slane %v431_v44, %v435_v43 }
 0x111   :  { %559 = vmatprep.subr.bf16.mxu1 %v227_v54  ;;  %v226_v55 = vpack.c.bf16 %v215_v53, %v214_v52 }
 0x112   :  { %560 = vmatpush3.bf16.msra.mxu1 %v227_v54 }
 0x113   :  { %561 = vmatprep.subr.bf16.mxu1 %v226_v55 }
 0x116   :  { %562 = vmatpush3.bf16.msra.mxu1 %v226_v55 }
 0x119   :  { %564 = vmatmul.mubr.msk.bf16.vlgmr.msra.gmra.mxu1 %vm130_vm0, %v608_v56 }
 0x11a   :  { %571 = vmatprep.mubr.msk.bf16.mxu1 %vm130_vm0, %v609_v57 }
 0x1d9   :  { %v565_v60 = vpop.f32.mrf.mxu1 }
 0x1da   :  { %v307_v61 = vadd.f32 %v565_v60, %v241_v58 }
 0x1db   :  { %v298_v63 = vpop.f32.mrf.mxu1 }
 0x1dc   :  { %v299_v0 = vadd.f32 %v298_v63, %v231_v62  ;;  %v315_v2 = vmul.f32 0.01, %v307_v61 }
 0x1dd   :  { %v566_v1 = vpop.f32.mrf.mxu1 }
 0x1de   :  { %v310_v3 = vadd.f32 %v566_v1, %v246_v59  ;;  %v313_v6 = vmul.f32 0.01, %v299_v0  ;;  %v319_v9 = vmax.f32 %v307_v61, %v315_v2 }
 0x1df   :  { %v301_v5 = vpop.f32.mrf.mxu1 }
 0x1e0   :  { %v316_v7 = vmul.f32 0.01, %v310_v3  ;;  %v302_v8 = vadd.f32 %v301_v5, %v236_v4  ;;  %v317_v12 = vmax.f32 %v299_v0, %v313_v6 }
 0x1e2   :  { %v320_v10 = vmax.f32 %v310_v3, %v316_v7  ;;  %v314_v11 = vmul.f32 0.01, %v302_v8 }
 0x1e4   :  { %v318_v13 = vmax.f32 %v302_v8, %v314_v11  ;;  %v330_v14 = vpack.c.bf16 %v320_v10, %v319_v9 }
 0x1e6   :  { %567 = vmatprep.subr.bf16.mxu1 %v330_v14  ;;  %v329_v15 = vpack.c.bf16 %v318_v13, %v317_v12 }
 0x1e7   :  { %568 = vmatpush3.bf16.msra.mxu1 %v330_v14 }
 0x1e8   :  { %569 = vmatprep.subr.bf16.mxu1 %v329_v15 }
 0x1eb   :  { %570 = vmatpush3.bf16.msra.mxu1 %v329_v15 }
 0x1ec   :  { %575 = vmatprep.subr.bf16.mxu1 %v634_v17 }
 0x1ee   :  { %572 = vmatmul.mubr.msk.bf16.vlgmr.msra.gmra.mxu1 %vm130_vm0, %v610_v16 }
 0x1ef   :  { %579 = vmatprep.mubr.msk.bf16.mxu1 %vm635_vm1, %v634_v17 }
 0x2ae   :  { %v573_v20 = vpop.f32.mrf.mxu1 }
 0x2af   :  { %v410_v21 = vadd.f32 %v573_v20, %v344_v18 }
 0x2b0   :  { %v401_v22 = vpop.f32.mrf.mxu1 }
 0x2b1   :  { %v418_v25 = vmul.f32 0.01, %v410_v21  ;;  %v402_v26 = vadd.f32 %v401_v22, %v334_v23 }
 0x2b2   :  { %v574_v24 = vpop.f32.mrf.mxu1 }
 0x2b3   :  { %v413_v27 = vadd.f32 %v574_v24, %v349_v19  ;;  %v422_v32 = vmax.f32 %v410_v21, %v418_v25  ;;  %v416_v33 = vmul.f32 0.01, %v402_v26 }
 0x2b4   :  { %v404_v29 = vpop.f32.mrf.mxu1 }
 0x2b5   :  { %v419_v30 = vmul.f32 0.01, %v413_v27  ;;  %v405_v31 = vadd.f32 %v404_v29, %v339_v28  ;;  %v420_v38 = vmax.f32 %v402_v26, %v416_v33 }
 0x2b7   :  { %v423_v34 = vmax.f32 %v413_v27, %v419_v30  ;;  %v417_v35 = vmul.f32 0.01, %v405_v31 }
 0x2b9   :  { %v427_v36 = vpack.c.bf16 %v423_v34, %v422_v32  ;;  %v421_v37 = vmax.f32 %v405_v31, %v417_v35 }
 0x2bb   :  { %576 = vmatpush3.bf16.msra.mxu1 %v427_v36  ;;  %v426_v39 = vpack.c.bf16 %v421_v37, %v420_v38 }
 0x2bc   :  { %577 = vmatprep.subr.bf16.mxu1 %v634_v17 }
 0x2bf   :  { %578 = vmatpush3.bf16.msra.mxu1 %v426_v39 }
 0x2c2   :  { %580 = vmatmul.mubr.msk.bf16.vlgmr.msra.gmra.mxu1 %vm130_vm0, %v424_v40 }
 0x382   :  { %v474_v46 = vpop.f32.mrf.mxu1 }
 0x383   :  { %v475_v47 = vadd.f32 %v474_v46, %v436_v45 }
 0x384   :  { %v581_v48 = vpop.f32.mrf.mxu1 }
 0x385   :  { %v480_v49 = vmul.f32 0.01, %v475_v47 }
 0x386   :  { %v477_v50 = vpop.f32.mrf.mxu1 }
 0x387   :  { %v481_v51 = vmax.f32 %v475_v47, %v480_v49 }
 0x388   :  { %v582_v52 = vpop.f32.mrf.mxu1 }
 0x389   :  { %482 = vst [vmem:[#allocation3] sm:$0x1] %v481_v51 }
 0x38a   :  { %622 = shalt.err (!%p619_p4)
}
 0x38b   :  { %492 = dma.vmem_to_hbm [thread:$0]  %s490_s14, 16, %s806_s9, [#allocation4]  }
 0x38c   :  { %631 = dma.done.wait [#allocation4], 16  }
 0x38d   :  { %632 = vsyncadd [#allocation4], 4294967280 }
 0x38e   :  { %496 = vsyncpa [#allocation4], 1 }

</bundles_post_ra>
